<compile_context>
chip_gen: v7x
topology: tpu7x:2x2x1
jax: 0.10.0
libtpu: 0.0.40
codegen_flags: <defaults>
</compile_context>

<pallas_src>
import jax
import jax.numpy as jnp
from jax.experimental import pallas as pl
from jax.experimental.pallas import tpu as pltpu


def mlp_kernel(x_ref, w13_ref, b13_ref, w2_ref, b2_ref, o_ref):
    x = x_ref[...]                                                   # (tb, D) f32
    # Fused fc1+fc3 on the MXU with f32 accumulation, then relu on the VPU.
    h = jnp.dot(x, w13_ref[...], preferred_element_type=jnp.float32) + b13_ref[...]
    h = jnp.maximum(h, 0.0)                                          # relu
    # fc2 has a single output feature: elementwise multiply (VPU) + cross-lane
    # sum (XLU) with keepdims, stored straight to a (tb, 1) column -- no
    # sublane->lane relayout, and no N=1 matmul wasting an MXU pass.
    logit = jnp.sum(h * w2_ref[...], axis=-1, keepdims=True) + b2_ref[0]   # (tb, 1)
    # Exact sigmoid (EUP exp + exact divide).
    o_ref[...] = 1.0 / (1.0 + jnp.exp(-logit))


def prepare_params(params):
    """One-time parameter prep: fuse fc1+fc3 and pad hidden 30 -> 32.

    Fusion is exact (no nonlinearity between fc1 and fc3); padded rows/columns
    are zero-filled so they contribute exactly zero.
    """
    H = params["w1"].shape[1]
    Hp = ((H + 7) // 8) * 8                   # 30 -> 32, sublane aligned
    pad_h = Hp - H

    w13 = params["w1"] @ params["w3"]                           # (D, H)
    b13 = params["b1"] @ params["w3"] + params["b3"]            # (H,)

    return {
        "w13": jnp.pad(w13, ((0, 0), (0, pad_h))),              # (D, Hp)
        "b13": jnp.pad(b13, ((0, pad_h),)).reshape(1, Hp),      # (1, Hp)
        "w2": jnp.pad(params["w2"], ((0, 0), (0, pad_h))),      # (1, Hp) fc2 row
        "b2": params["b2"].reshape(1).astype(jnp.float32),      # (1,)  -> SMEM
    }


def _round_up(n, m):
    return ((n + m - 1) // m) * m


def _forward_impl(x, prepared):
    B, D = x.shape
    Hp = prepared["w13"].shape[1]

    # Single grid step at small batch; only split (and shard across TCs via
    # "parallel") once per-step work amortizes the ~0.35 us grid-step overhead.
    if B <= 4096:
        block_b = _round_up(B, 8)
    else:
        block_b = 2048
    nb = pl.cdiv(B, block_b)
    Bp = nb * block_b
    if Bp != B:
        x = jnp.pad(x, ((0, Bp - B), (0, 0)))

    out = pl.pallas_call(
        mlp_kernel,
        out_shape=jax.ShapeDtypeStruct((Bp, 1), jnp.float32),
        grid_spec=pltpu.PrefetchScalarGridSpec(
            num_scalar_prefetch=0,
            grid=(nb,),
            in_specs=[
                pl.BlockSpec((block_b, D), lambda i: (i, 0)),        # x row tile
                pl.BlockSpec((D, Hp), lambda i: (0, 0)),             # fused W13 (resident)
                pl.BlockSpec((1, Hp), lambda i: (0, 0)),             # fused b13
                pl.BlockSpec((1, Hp), lambda i: (0, 0)),             # w2 row
                pl.BlockSpec(memory_space=pltpu.MemorySpace.SMEM),   # b2 scalar
            ],
            out_specs=pl.BlockSpec((block_b, 1), lambda i: (i, 0)),
        ),
        compiler_params=pltpu.CompilerParams(
            dimension_semantics=("parallel",),
            # NOTE: at these shapes VMEM use is a few KiB; if block_b is ever
            # scaled to ~1e5 rows, set vmem_limit_bytes (v5e default scoped
            # VMEM is 16 MiB).
        ),
    )(x, prepared["w13"], prepared["b13"], prepared["w2"], prepared["b2"])

    return out[:B]


# jitted forward; all per-call work is x-padding (usually none) + the kernel.
net_forward = jax.jit(_forward_impl)


def init_params(key, input_size, hidden_size):
    """PyTorch-style uniform(-1/sqrt(fan_in), 1/sqrt(fan_in)) init.

    fc1/fc3 weights stored transposed ([in, out]); fc2 weight kept as a (1, H) row.
    """
    k1, k2, k3, k4, k5, k6 = jax.random.split(key, 6)

    def u(k, shape, fan_in):
        bound = 1.0 / jnp.sqrt(jnp.float32(fan_in))
        return jax.random.uniform(k, shape, jnp.float32, -bound, bound)

    return {
        "w1": u(k1, (input_size, hidden_size), input_size),
        "b1": u(k2, (hidden_size,), input_size),
        "w3": u(k3, (hidden_size, hidden_size), hidden_size),
        "b3": u(k4, (hidden_size,), hidden_size),
        "w2": u(k5, (1, hidden_size), hidden_size),
        "b2": u(k6, (1,), hidden_size),
    }


def net_forward_ref(x, params):
    """Pure-JAX reference (mirrors the PyTorch forward, unfused)."""
    h1 = x @ params["w1"] + params["b1"]
    h2 = h1 @ params["w3"] + params["b3"]
    h2 = jnp.maximum(h2, 0.0)
    out = h2 @ params["w2"].T + params["b2"]
    return jax.nn.sigmoid(out)


if __name__ == "__main__":
    input_size = 16       # number of input features (columns of training_input)
    hidden_size = 30      # as in the PyTorch module
    batch = 256

    key = jax.random.PRNGKey(0)
    k_x, k_p = jax.random.split(key)
    x = jax.random.normal(k_x, (batch, input_size), dtype=jnp.float32)
    params = init_params(k_p, input_size, hidden_size)

    prepared = prepare_params(params)     # one-time pad + fc1/fc3 fusion

    out = net_forward(x, prepared)
    out = jax.block_until_ready(out)

    ref = net_forward_ref(x, params)
    assert out.shape == (batch, 1)
    # Tiny tolerance only for the changed f32 rounding order of the fused
    # W1@W3 matmul; the sigmoid itself is exact.
    assert jnp.allclose(out, ref, atol=1e-4, rtol=0.0), "mismatch vs reference"

    print("KERNEL_OK")
</pallas_src>

<mosaic_0001>
module attributes {stable_mosaic.version = 11 : i64} {
  func.func @mlp_kernel(%arg0: i32, %arg1: memref<256x16xf32, #tpu.memory_space<vmem>>, %arg2: memref<16x32xf32, #tpu.memory_space<vmem>>, %arg3: memref<1x32xf32, #tpu.memory_space<vmem>>, %arg4: memref<1x32xf32, #tpu.memory_space<vmem>>, %arg5: memref<1xf32, #tpu.memory_space<smem>>, %arg6: memref<256x1xf32, #tpu.memory_space<vmem>>) attributes {dimension_semantics = [#tpu.dimension_semantics<parallel>], iteration_bounds = array<i64: 1>, scalar_prefetch = 0 : i64, scratch_operands = 0 : i64, tpu.core_type = #tpu.core_type<tc>, window_params = [{transform_indices = @transform_0, window_bounds = array<i64: 256, 16>}, {pipeline_mode = #tpu.pipeline_mode<synchronous>, transform_indices = @transform_1, window_bounds = array<i64: 16, 32>}, {pipeline_mode = #tpu.pipeline_mode<synchronous>, transform_indices = @transform_2, window_bounds = array<i64: 1, 32>}, {pipeline_mode = #tpu.pipeline_mode<synchronous>, transform_indices = @transform_3, window_bounds = array<i64: 1, 32>}, {transform_indices = @transform_4, window_bounds = array<i64: 1>}, {transform_indices = @transform_5, window_bounds = array<i64: 256, 1>}]} {
    %c0 = arith.constant 0 : index
    %c0_0 = arith.constant 0 : index
    %0 = vector.load %arg1[%c0, %c0_0] : memref<256x16xf32, #tpu.memory_space<vmem>>, vector<256x16xf32>
    %c0_1 = arith.constant 0 : index
    %c0_2 = arith.constant 0 : index
    %1 = vector.load %arg2[%c0_1, %c0_2] : memref<16x32xf32, #tpu.memory_space<vmem>>, vector<16x32xf32>
    %cst = arith.constant dense<0.000000e+00> : vector<256x32xf32>
    %2 = tpu.matmul %0, %1, %cst {dimension_numbers = #tpu.dot_dimension_numbers<[1], [0], [0], [1], [0, 0, 1, 1], [], []>} : vector<256x16xf32>, vector<16x32xf32>, vector<256x32xf32> -> vector<256x32xf32>
    %c0_3 = arith.constant 0 : index
    %c0_4 = arith.constant 0 : index
    %3 = vector.load %arg3[%c0_3, %c0_4] : memref<1x32xf32, #tpu.memory_space<vmem>>, vector<1x32xf32>
    %4 = vector.broadcast %3 : vector<1x32xf32> to vector<256x32xf32>
    %5 = arith.addf %2, %4 : vector<256x32xf32>
    %cst_5 = arith.constant 0.000000e+00 : f32
    %6 = vector.broadcast %cst_5 : f32 to vector<256x32xf32>
    %7 = arith.maximumf %5, %6 : vector<256x32xf32>
    %c0_6 = arith.constant 0 : index
    %c0_7 = arith.constant 0 : index
    %8 = vector.load %arg4[%c0_6, %c0_7] : memref<1x32xf32, #tpu.memory_space<vmem>>, vector<1x32xf32>
    %9 = vector.broadcast %8 : vector<1x32xf32> to vector<256x32xf32>
    %10 = arith.mulf %7, %9 : vector<256x32xf32>
    %cst_8 = arith.constant dense<0.000000e+00> : vector<256xf32>
    %11 = vector.multi_reduction <add>, %10, %cst_8 [1] : vector<256x32xf32> to vector<256xf32>
    %12 = vector.shape_cast %11 : vector<256xf32> to vector<256x1xf32>
    %c0_9 = arith.constant 0 : index
    %13 = memref.load %arg5[%c0_9] : memref<1xf32, #tpu.memory_space<smem>>
    %14 = vector.broadcast %13 : f32 to vector<256x1xf32>
    %15 = arith.addf %12, %14 : vector<256x1xf32>
    %cst_10 = arith.constant 0.000000e+00 : f32
    %16 = vector.broadcast %cst_10 : f32 to vector<256x1xf32>
    %17 = arith.subf %16, %15 : vector<256x1xf32>
    %18 = math.exp %17 : vector<256x1xf32>
    %cst_11 = arith.constant 1.000000e+00 : f32
    %19 = vector.broadcast %cst_11 : f32 to vector<256x1xf32>
    %20 = arith.addf %19, %18 : vector<256x1xf32>
    %cst_12 = arith.constant 1.000000e+00 : f32
    %21 = vector.broadcast %cst_12 : f32 to vector<256x1xf32>
    %22 = arith.divf %21, %20 : vector<256x1xf32>
    %c0_13 = arith.constant 0 : index
    %c0_14 = arith.constant 0 : index
    %23 = vector.load %arg6[%c0_13, %c0_14] : memref<256x1xf32, #tpu.memory_space<vmem>>, vector<256x1xf32>
    tpu.vector_store %arg6[%c0_13, %c0_14], %22 {strides = array<i32>} : memref<256x1xf32, #tpu.memory_space<vmem>>, vector<256x1xf32>,
    return
  }
  func.func @transform_0(%arg0: i32) -> (i32, i32) {
    %c0_i32 = arith.constant 0 : i32
    %c0_i32_0 = arith.constant 0 : i32
    return %arg0, %c0_i32 : i32, i32
  }
  func.func @transform_1(%arg0: i32) -> (i32, i32) {
    %c0_i32 = arith.constant 0 : i32
    %c0_i32_0 = arith.constant 0 : i32
    %c0_i32_1 = arith.constant 0 : i32
    return %c0_i32, %c0_i32_0 : i32, i32
  }
  func.func @transform_2(%arg0: i32) -> (i32, i32) {
    %c0_i32 = arith.constant 0 : i32
    %c0_i32_0 = arith.constant 0 : i32
    %c0_i32_1 = arith.constant 0 : i32
    return %c0_i32, %c0_i32_0 : i32, i32
  }
  func.func @transform_3(%arg0: i32) -> (i32, i32) {
    %c0_i32 = arith.constant 0 : i32
    %c0_i32_0 = arith.constant 0 : i32
    %c0_i32_1 = arith.constant 0 : i32
    return %c0_i32, %c0_i32_0 : i32, i32
  }
  func.func @transform_4(%arg0: i32) -> i32 {
    %c0_i32 = arith.constant 0 : i32
    %c0_i32_0 = arith.constant 0 : i32
    return %c0_i32 : i32
  }
  func.func @transform_5(%arg0: i32) -> (i32, i32) {
    %c0_i32 = arith.constant 0 : i32
    %c0_i32_0 = arith.constant 0 : i32
    return %arg0, %c0_i32 : i32, i32
  }
}

</mosaic_0001>

<bundles_post_ra>
// kernel: _forward_impl.1
= control target key start
LH: loop header
LB: loop body
LE: loop exit
PB: predicated region body
PF: predicated region fallthrough
CT: control target
= control target key end

     0   :  { %vm62_vm0 = vcmask 130048   ;;  %vm455_vm1 = vcmask 261120   ;;  %vm778_vm2 = vcmask 7168   ;;  %s1504_s1 = inlined_call_operand.vmem [shape: f32[16,32], index: 1, kind: input, shape index: {}]   ;;  %s1505_s0 = inlined_call_operand.vmem [shape: f32[256,16], index: 0, kind: input, shape index: {}]   ;;  %s1506_s2 = inlined_call_operand.vmem [shape: f32[1,32], index: 2, kind: input, shape index: {}]   ;;  %s1507_s3 = inlined_call_operand.vmem [shape: f32[1,32], index: 3, kind: input, shape index: {}]   ;;  %s1508_s4 = inlined_call_operand.<no memory space> [shape: f32[1], index: 4, kind: input, shape index: {}]   ;;  %s1509_s5 = inlined_call_operand.vmem [shape: f32[256,1], index: 5, kind: output, shape index: {}]  }
   0x1   :  { %v53_v0 = vld [vmem:[%s1504_s1] sm:$0xff]  ;;  %v54_v1 = vld [vmem:[%s1504_s1 + $0x8] sm:$0xff]  ;;  %v23_v7 = vld [vmem:[%s1505_s0 + $0x10] sm:$0xff] }
   0x2   :  { %v21_v2 = vld [vmem:[%s1505_s0] sm:$0xff]  ;;  %v935_v3 = vpack.c.bf16 %v54_v1, %v53_v0  ;;  %v22_v5 = vld [vmem:[%s1505_s0 + $0x8] sm:$0xff]  ;;  %v39_v8 = vld [vmem:[%s1505_s0 + $0x90] sm:$0xff] }
   0x3   :  { %887 = vmatprep.mubr.msk.f32.mxu0 %vm62_vm0, %v21_v2  ;;  %v37_v4 = vld [vmem:[%s1505_s0 + $0x80] sm:$0xff]  ;;  %v38_v6 = vld [vmem:[%s1505_s0 + $0x88] sm:$0xff]  ;;  %v24_v9 = vld [vmem:[%s1505_s0 + $0x18] sm:$0xff] }
   0x4   :  { %911 = vmatprep.mubr.msk.f32.mxu1 %vm62_vm0, %v37_v4  ;;  %936 = vmatprep.subr.bf16.mxu0 %v935_v3  ;;  %v40_v10 = vld [vmem:[%s1505_s0 + $0x98] sm:$0xff]  ;;  %v25_v11 = vld [vmem:[%s1505_s0 + $0x20] sm:$0xff]  ;;  %v26_v13 = vld [vmem:[%s1505_s0 + $0x28] sm:$0xff] }
   0x5   :  { %939 = vmatprep.subr.bf16.mxu1 %v935_v3  ;;  %938 = vmatpush3.bf16.msra.mxu0 %v935_v3  ;;  %v41_v12 = vld [vmem:[%s1505_s0 + $0xa0] sm:$0xff]  ;;  %v42_v14 = vld [vmem:[%s1505_s0 + $0xa8] sm:$0xff]  ;;  %v27_v15 = vld [vmem:[%s1505_s0 + $0x30] sm:$0xff] }
   0x6   :  { %940 = vmatpush3.bf16.msra.mxu1 %v935_v3  ;;  %v43_v16 = vld [vmem:[%s1505_s0 + $0xb0] sm:$0xff]  ;;  %v28_v17 = vld [vmem:[%s1505_s0 + $0x38] sm:$0xff]  ;;  %v29_v19 = vld [vmem:[%s1505_s0 + $0x40] sm:$0xff] }
   0x7   :  { %v44_v18 = vld [vmem:[%s1505_s0 + $0xb8] sm:$0xff]  ;;  %v45_v20 = vld [vmem:[%s1505_s0 + $0xc0] sm:$0xff]  ;;  %v30_v21 = vld [vmem:[%s1505_s0 + $0x48] sm:$0xff] }
   0x8   :  { %888 = vmatmul.mubr.msk.f32.vlgmr.msra.gmra.mrb[0].mxu0 %vm62_vm0, %v22_v5  ;;  %v46_v22 = vld [vmem:[%s1505_s0 + $0xc8] sm:$0xff]  ;;  %v31_v23 = vld [vmem:[%s1505_s0 + $0x50] sm:$0xff]  ;;  %v32_v25 = vld [vmem:[%s1505_s0 + $0x58] sm:$0xff] }
   0x9   :  { %912 = vmatmul.mubr.msk.f32.vlgmr.msra.gmra.mrb[0].mxu1 %vm62_vm0, %v38_v6  ;;  %890 = vmatprep.mubr.msk.f32.mxu0 %vm62_vm0, %v23_v7  ;;  %v47_v24 = vld [vmem:[%s1505_s0 + $0xd0] sm:$0xff]  ;;  %v48_v26 = vld [vmem:[%s1505_s0 + $0xd8] sm:$0xff]  ;;  %v33_v27 = vld [vmem:[%s1505_s0 + $0x60] sm:$0xff] }
   0xa   :  { %914 = vmatprep.mubr.msk.f32.mxu1 %vm62_vm0, %v39_v8  ;;  %v49_v28 = vld [vmem:[%s1505_s0 + $0xe0] sm:$0xff]  ;;  %v34_v29 = vld [vmem:[%s1505_s0 + $0x68] sm:$0xff]  ;;  %v35_v31 = vld [vmem:[%s1505_s0 + $0x70] sm:$0xff] }
   0xb   :  { %v50_v30 = vld [vmem:[%s1505_s0 + $0xe8] sm:$0xff]  ;;  %v51_v32 = vld [vmem:[%s1505_s0 + $0xf0] sm:$0xff]  ;;  %v36_v33 = vld [vmem:[%s1505_s0 + $0x78] sm:$0xff] }
   0xc   :  { %891 = vmatmul.mubr.msk.f32.gmra.mrb[2].mxu0 %vm62_vm0, %v24_v9  ;;  %v52_v34 = vld [vmem:[%s1505_s0 + $0xf8] sm:$0xff]  ;;  %v1236_v35 = vld [vmem:[%s1506_s2] ss:$0 sm:$0xff] }
   0xd   :  { %915 = vmatmul.mubr.msk.f32.gmra.mrb[2].mxu1 %vm62_vm0, %v40_v10  ;;  %893 = vmatprep.mubr.msk.f32.mxu0 %vm62_vm0, %v25_v11  ;;  %v1245_v44 = vld [vmem:[%s1507_s3] ss:$0 sm:$0xff] }
   0xe   :  { %917 = vmatprep.mubr.msk.f32.mxu1 %vm62_vm0, %v41_v12 }
  0x10   :  { %894 = vmatmul.mubr.msk.f32.gmra.mrb[4].mxu0 %vm62_vm0, %v26_v13 }
  0x11   :  { %918 = vmatmul.mubr.msk.f32.gmra.mrb[4].mxu1 %vm62_vm0, %v42_v14  ;;  %896 = vmatprep.mubr.msk.f32.mxu0 %vm62_vm0, %v27_v15 }
  0x12   :  { %920 = vmatprep.mubr.msk.f32.mxu1 %vm62_vm0, %v43_v16 }
  0x14   :  { %897 = vmatmul.mubr.msk.f32.gmra.mrb[6].mxu0 %vm62_vm0, %v28_v17 }
  0x15   :  { %921 = vmatmul.mubr.msk.f32.gmra.mrb[6].mxu1 %vm62_vm0, %v44_v18  ;;  %899 = vmatprep.mubr.msk.f32.mxu0 %vm62_vm0, %v29_v19 }
  0x16   :  { %923 = vmatprep.mubr.msk.f32.mxu1 %vm62_vm0, %v45_v20 }
  0x18   :  { %900 = vmatmul.mubr.msk.f32.gmra.mrb[8].mxu0 %vm62_vm0, %v30_v21 }
  0x19   :  { %924 = vmatmul.mubr.msk.f32.gmra.mrb[8].mxu1 %vm62_vm0, %v46_v22  ;;  %902 = vmatprep.mubr.msk.f32.mxu0 %vm62_vm0, %v31_v23 }
  0x1a   :  { %926 = vmatprep.mubr.msk.f32.mxu1 %vm62_vm0, %v47_v24 }
  0x1c   :  { %903 = vmatmul.mubr.msk.f32.gmra.mrb[10].mxu0 %vm62_vm0, %v32_v25 }
  0x1d   :  { %927 = vmatmul.mubr.msk.f32.gmra.mrb[10].mxu1 %vm62_vm0, %v48_v26  ;;  %905 = vmatprep.mubr.msk.f32.mxu0 %vm62_vm0, %v33_v27 }
  0x1e   :  { %929 = vmatprep.mubr.msk.f32.mxu1 %vm62_vm0, %v49_v28 }
  0x20   :  { %906 = vmatmul.mubr.msk.f32.gmra.mrb[12].mxu0 %vm62_vm0, %v34_v29 }
  0x21   :  { %930 = vmatmul.mubr.msk.f32.gmra.mrb[12].mxu1 %vm62_vm0, %v50_v30  ;;  %908 = vmatprep.mubr.msk.f32.mxu0 %vm62_vm0, %v35_v31 }
  0x22   :  { %932 = vmatprep.mubr.msk.f32.mxu1 %vm62_vm0, %v51_v32 }
  0x24   :  { %909 = vmatmul.mubr.msk.f32.gmra.mrb[14].mxu0 %vm62_vm0, %v36_v33 }
  0x25   :  { %933 = vmatmul.mubr.msk.f32.gmra.mrb[14].mxu1 %vm62_vm0, %v52_v34 }
  0xdb   :  { %v889_v36 = vpop.f32.mrb[0].mxu0 }
  0xdc   :  { %v913_v37 = vpop.f32.mrb[0].mxu1  ;;  %v231_v38 = vadd.f32 %v889_v36, %v1236_v35  ;;  %v225_v40 = vpop.f32.mrb[1].mxu0 }
  0xdd   :  { %v311_v39 = vadd.f32 %v913_v37, %v1236_v35  ;;  %v305_v41 = vpop.f32.mrb[1].mxu1  ;;  %v226_v42 = vadd.f32 %v1236_v35, %v225_v40 }
  0xde   :  { %v306_v43 = vadd.f32 %v1236_v35, %v305_v41  ;;  %v385_v45 = vmax.f32 %v231_v38, 0.0 }
  0xdf   :  { %v401_v46 = vmax.f32 %v311_v39, 0.0  ;;  %v384_v47 = vmax.f32 %v226_v42, 0.0  ;;  %v892_v48 = vpop.f32.mrb[2].mxu0 }
  0xe0   :  { %v916_v49 = vpop.f32.mrb[2].mxu1  ;;  %v241_v50 = vadd.f32 %v892_v48, %v1236_v35  ;;  %v235_v51 = vpop.f32.mrb[3].mxu0  ;;  %v424_v55 = vmul.f32 %v1245_v44, %v385_v45  ;;  %v400_v56 = vmax.f32 %v306_v43, 0.0 }
  0xe1   :  { %v321_v52 = vadd.f32 %v916_v49, %v1236_v35  ;;  %v440_v53 = vmul.f32 %v1245_v44, %v401_v46  ;;  %v315_v54 = vpop.f32.mrb[3].mxu1  ;;  %v236_v57 = vadd.f32 %v1236_v35, %v235_v51  ;;  %v423_v59 = vmul.f32 %v1245_v44, %v384_v47 }
  0xe2   :  { %v316_v58 = vadd.f32 %v1236_v35, %v315_v54  ;;  %v387_v60 = vmax.f32 %v241_v50, 0.0  ;;  %v459_v63 = vsel %vm455_vm1, %v424_v55, 0.0  ;;  %v439_v8 = vmul.f32 %v1245_v44, %v400_v56 }
  0xe3   :  { %v403_v61 = vmax.f32 %v321_v52, 0.0  ;;  %v507_v62 = vsel %vm455_vm1, %v440_v53, 0.0  ;;  %460 = vadd.xlane.f32.xlu0 %v459_v63  ;;  %v895_v0 = vpop.f32.mrb[4].mxu0  ;;  %v386_v9 = vmax.f32 %v236_v57, 0.0  ;;  %v456_v12 = vsel %vm455_vm1, %v423_v59, 0.0 }
  0xe4   :  { %508 = vadd.xlane.f32.xlu1 %v507_v62  ;;  %v919_v1 = vpop.f32.mrb[4].mxu1  ;;  %v426_v2 = vmul.f32 %v1245_v44, %v387_v60  ;;  %v251_v3 = vadd.f32 %v895_v0, %v1236_v35  ;;  %v245_v4 = vpop.f32.mrb[5].mxu0  ;;  %v402_v10 = vmax.f32 %v316_v58, 0.0  ;;  %v504_v22 = vsel %vm455_vm1, %v439_v8, 0.0 }
  0xe5   :  { %v442_v5 = vmul.f32 %v1245_v44, %v403_v61  ;;  %v325_v6 = vpop.f32.mrb[5].mxu1  ;;  %v246_v7 = vadd.f32 %v1236_v35, %v245_v4  ;;  %v331_v13 = vadd.f32 %v919_v1, %v1236_v35  ;;  %v425_v23 = vmul.f32 %v1245_v44, %v386_v9 }
  0xe6   :  { %v465_v11 = vsel %vm455_vm1, %v426_v2, 0.0  ;;  %v326_v14 = vadd.f32 %v1236_v35, %v325_v6  ;;  %v389_v17 = vmax.f32 %v251_v3, 0.0  ;;  %v441_v24 = vmul.f32 %v1245_v44, %v402_v10 }
  0xe7   :  { %457 = vadd.xlane.f32.xlu0 %v456_v12  ;;  %v898_v15 = vpop.f32.mrb[6].mxu0  ;;  %v388_v18 = vmax.f32 %v246_v7, 0.0  ;;  %v513_v19 = vsel %vm455_vm1, %v442_v5, 0.0  ;;  %v405_v25 = vmax.f32 %v331_v13, 0.0  ;;  %v462_v36 = vsel %vm455_vm1, %v425_v23, 0.0 }
  0xe8   :  { %466 = vadd.xlane.f32.xlu1 %v465_v11  ;;  %v922_v16 = vpop.f32.mrb[6].mxu1  ;;  %v255_v20 = vpop.f32.mrb[7].mxu0  ;;  %v404_v26 = vmax.f32 %v326_v14, 0.0  ;;  %v261_v29 = vadd.f32 %v898_v15, %v1236_v35  ;;  %v428_v31 = vmul.f32 %v1245_v44, %v389_v17  ;;  %v510_v37 = vsel %vm455_vm1, %v441_v24, 0.0 }
  0xe9   :  { %v335_v21 = vpop.f32.mrb[7].mxu1  ;;  %v256_v30 = vadd.f32 %v1236_v35, %v255_v20  ;;  %v427_v32 = vmul.f32 %v1245_v44, %v388_v18  ;;  %v341_v38 = vadd.f32 %v922_v16, %v1236_v35  ;;  %v444_v40 = vmul.f32 %v1245_v44, %v405_v25 }
  0xea   :  { %v336_v39 = vadd.f32 %v1236_v35, %v335_v21  ;;  %v443_v41 = vmul.f32 %v1245_v44, %v404_v26  ;;  %v391_v45 = vmax.f32 %v261_v29, 0.0  ;;  %v471_v47 = vsel %vm455_vm1, %v428_v31, 0.0 }
  0xeb   :  { %505 = vadd.xlane.f32.xlu0 %v504_v22  ;;  %v901_v27 = vpop.f32.mrb[8].mxu0  ;;  %v390_v46 = vmax.f32 %v256_v30, 0.0  ;;  %v468_v48 = vsel %vm455_vm1, %v427_v32, 0.0  ;;  %v407_v51 = vmax.f32 %v341_v38, 0.0  ;;  %v519_v53 = vsel %vm455_vm1, %v444_v40, 0.0 }
  0xec   :  { %514 = vadd.xlane.f32.xlu1 %v513_v19  ;;  %v925_v28 = vpop.f32.mrb[8].mxu1  ;;  %v265_v33 = vpop.f32.mrb[9].mxu0  ;;  %v406_v52 = vmax.f32 %v336_v39, 0.0  ;;  %v516_v54 = vsel %vm455_vm1, %v443_v41, 0.0  ;;  %v271_v57 = vadd.f32 %v901_v27, %v1236_v35  ;;  %v430_v59 = vmul.f32 %v1245_v44, %v391_v45 }
  0xed   :  { %v345_v34 = vpop.f32.mrb[9].mxu1  ;;  %v266_v58 = vadd.f32 %v1236_v35, %v265_v33  ;;  %v429_v60 = vmul.f32 %v1245_v44, %v390_v46  ;;  %v351_v63 = vadd.f32 %v925_v28, %v1236_v35  ;;  %v446_v1 = vmul.f32 %v1245_v44, %v407_v51 }
  0xee   :  { %v346_v0 = vadd.f32 %v1236_v35, %v345_v34  ;;  %v445_v2 = vmul.f32 %v1245_v44, %v406_v52  ;;  %v393_v5 = vmax.f32 %v271_v57, 0.0  ;;  %v477_v7 = vsel %vm455_vm1, %v430_v59, 0.0 }
  0xef   :  { %511 = vadd.xlane.f32.xlu0 %v510_v37  ;;  %v904_v42 = vpop.f32.mrb[10].mxu0  ;;  %v392_v6 = vmax.f32 %v266_v58, 0.0  ;;  %v474_v8 = vsel %vm455_vm1, %v429_v60, 0.0  ;;  %v409_v11 = vmax.f32 %v351_v63, 0.0  ;;  %v525_v13 = vsel %vm455_vm1, %v446_v1, 0.0 }
  0xf0   :  { %463 = vadd.xlane.f32.xlu1 %v462_v36  ;;  %v928_v43 = vpop.f32.mrb[10].mxu1  ;;  %v275_v49 = vpop.f32.mrb[11].mxu0  ;;  %v408_v12 = vmax.f32 %v346_v0, 0.0  ;;  %v522_v14 = vsel %vm455_vm1, %v445_v2, 0.0  ;;  %v281_v15 = vadd.f32 %v904_v42, %v1236_v35  ;;  %v432_v17 = vmul.f32 %v1245_v44, %v393_v5 }
  0xf1   :  { %v355_v50 = vpop.f32.mrb[11].mxu1  ;;  %v276_v16 = vadd.f32 %v1236_v35, %v275_v49  ;;  %v431_v18 = vmul.f32 %v1245_v44, %v392_v6  ;;  %v361_v19 = vadd.f32 %v928_v43, %v1236_v35  ;;  %v448_v21 = vmul.f32 %v1245_v44, %v409_v11 }
  0xf2   :  { %v356_v20 = vadd.f32 %v1236_v35, %v355_v50  ;;  %v447_v22 = vmul.f32 %v1245_v44, %v408_v12  ;;  %v395_v23 = vmax.f32 %v281_v15, 0.0  ;;  %v483_v25 = vsel %vm455_vm1, %v432_v17, 0.0 }
  0xf3   :  { %469 = vadd.xlane.f32.xlu0 %v468_v48  ;;  %v907_v55 = vpop.f32.mrb[12].mxu0  ;;  %v394_v24 = vmax.f32 %v276_v16, 0.0  ;;  %v480_v26 = vsel %vm455_vm1, %v431_v18, 0.0  ;;  %v411_v27 = vmax.f32 %v361_v19, 0.0  ;;  %v531_v29 = vsel %vm455_vm1, %v448_v21, 0.0 }
  0xf4   :  { %472 = vadd.xlane.f32.xlu1 %v471_v47  ;;  %v931_v56 = vpop.f32.mrb[12].mxu1  ;;  %v285_v61 = vpop.f32.mrb[13].mxu0  ;;  %v410_v28 = vmax.f32 %v356_v20, 0.0  ;;  %v528_v30 = vsel %vm455_vm1, %v447_v22, 0.0  ;;  %v291_v31 = vadd.f32 %v907_v55, %v1236_v35  ;;  %v434_v33 = vmul.f32 %v1245_v44, %v395_v23 }
  0xf5   :  { %v365_v62 = vpop.f32.mrb[13].mxu1  ;;  %v286_v32 = vadd.f32 %v1236_v35, %v285_v61  ;;  %v433_v34 = vmul.f32 %v1245_v44, %v394_v24  ;;  %v371_v36 = vadd.f32 %v931_v56, %v1236_v35  ;;  %v450_v38 = vmul.f32 %v1245_v44, %v411_v27 }
  0xf6   :  { %v366_v37 = vadd.f32 %v1236_v35, %v365_v62  ;;  %v449_v39 = vmul.f32 %v1245_v44, %v410_v28  ;;  %v397_v40 = vmax.f32 %v291_v31, 0.0  ;;  %v489_v42 = vsel %vm455_vm1, %v434_v33, 0.0 }
  0xf7   :  { %517 = vadd.xlane.f32.xlu0 %v516_v54  ;;  %v910_v3 = vpop.f32.mrb[14].mxu0  ;;  %v396_v41 = vmax.f32 %v286_v32, 0.0  ;;  %v486_v43 = vsel %vm455_vm1, %v433_v34, 0.0  ;;  %v413_v45 = vmax.f32 %v371_v36, 0.0  ;;  %v537_v47 = vsel %vm455_vm1, %v450_v38, 0.0 }
  0xf8   :  { %520 = vadd.xlane.f32.xlu1 %v519_v53  ;;  %v934_v4 = vpop.f32.mrb[14].mxu1  ;;  %v295_v9 = vpop.f32.mrb[15].mxu0  ;;  %v412_v46 = vmax.f32 %v366_v37, 0.0  ;;  %v534_v48 = vsel %vm455_vm1, %v449_v39, 0.0  ;;  %v301_v49 = vadd.f32 %v910_v3, %v1236_v35  ;;  %v436_v51 = vmul.f32 %v1245_v44, %v397_v40 }
  0xf9   :  { %v375_v10 = vpop.f32.mrb[15].mxu1  ;;  %v296_v50 = vadd.f32 %v1236_v35, %v295_v9  ;;  %v435_v52 = vmul.f32 %v1245_v44, %v396_v41  ;;  %v381_v53 = vadd.f32 %v934_v4, %v1236_v35  ;;  %v452_v55 = vmul.f32 %v1245_v44, %v413_v45 }
  0xfa   :  { %v376_v54 = vadd.f32 %v1236_v35, %v375_v10  ;;  %v451_v56 = vmul.f32 %v1245_v44, %v412_v46  ;;  %v399_v57 = vmax.f32 %v301_v49, 0.0  ;;  %v495_v59 = vsel %vm455_vm1, %v436_v51, 0.0 }
  0xfb   :  { %475 = vadd.xlane.f32.xlu0 %v474_v8  ;;  %v398_v58 = vmax.f32 %v296_v50, 0.0  ;;  %v492_v60 = vsel %vm455_vm1, %v435_v52, 0.0  ;;  %v415_v61 = vmax.f32 %v381_v53, 0.0  ;;  %v543_v62 = vsel %vm455_vm1, %v452_v55, 0.0 }
  0xfc   :  { %478 = vadd.xlane.f32.xlu1 %v477_v7  ;;  %v414_v63 = vmax.f32 %v376_v54, 0.0  ;;  %v540_v0 = vsel %vm455_vm1, %v451_v56, 0.0  ;;  %v438_v35 = vmul.f32 %v1245_v44, %v399_v57  ;;  %v1342_v8 = vstv %s1508_s4 }
  0xfd   :  { %v437_v1 = vmul.f32 %v1245_v44, %v398_v58  ;;  %v454_v4 = vmul.f32 %v1245_v44, %v415_v61 }
  0xfe   :  { %v501_v2 = vsel %vm455_vm1, %v438_v35, 0.0  ;;  %v453_v5 = vmul.f32 %v1245_v44, %v414_v63 }
  0xff   :  { %523 = vadd.xlane.f32.xlu0 %v522_v14  ;;  %v498_v3 = vsel %vm455_vm1, %v437_v1, 0.0  ;;  %v549_v6 = vsel %vm455_vm1, %v454_v4, 0.0 }
 0x100   :  { %526 = vadd.xlane.f32.xlu1 %v525_v13  ;;  %v546_v7 = vsel %vm455_vm1, %v453_v5, 0.0 }
 0x103   :  { %481 = vadd.xlane.f32.xlu0 %v480_v26 }
 0x104   :  { %484 = vadd.xlane.f32.xlu1 %v483_v25 }
 0x107   :  { %529 = vadd.xlane.f32.xlu0 %v528_v30 }
 0x108   :  { %532 = vadd.xlane.f32.xlu1 %v531_v29 }
 0x10b   :  { %487 = vadd.xlane.f32.xlu0 %v486_v43 }
 0x10c   :  { %490 = vadd.xlane.f32.xlu1 %v489_v42 }
 0x10f   :  { %535 = vadd.xlane.f32.xlu0 %v534_v48 }
 0x110   :  { %538 = vadd.xlane.f32.xlu1 %v537_v47 }
 0x113   :  { %493 = vadd.xlane.f32.xlu0 %v492_v60 }
 0x114   :  { %496 = vadd.xlane.f32.xlu1 %v495_v59 }
 0x117   :  { %541 = vadd.xlane.f32.xlu0 %v540_v0 }
 0x118   :  { %544 = vadd.xlane.f32.xlu1 %v543_v62 }
 0x11b   :  { %499 = vadd.xlane.f32.xlu0 %v498_v3 }
 0x11c   :  { %502 = vadd.xlane.f32.xlu1 %v501_v2 }
 0x11f   :  { %547 = vadd.xlane.f32.xlu0 %v546_v7 }
 0x120   :  { %550 = vadd.xlane.f32.xlu1 %v549_v6 }
 0x170   :  { %v461_v10 = vpop.xlane.xlu0 %460 }
 0x171   :  { %v509_v9 = vpop.xlane.xlu1 %508  ;;  %v555_v12 = vadd.f32 %v1342_v8, %v461_v10 }
 0x172   :  { %v571_v11 = vadd.f32 %v1342_v8, %v509_v9 }
 0x173   :  { %v587_v13 = vsub.f32 0.0, %v555_v12 }
 0x174   :  { %v603_v44 = vsub.f32 0.0, %v571_v11  ;;  %v458_v15 = vpop.xlane.xlu0 %457 }
 0x175   :  { %v467_v14 = vpop.xlane.xlu1 %466  ;;  %v620_v17 = vmul.f32 1.442695, %v587_v13  ;;  %v554_v19 = vadd.f32 %v1342_v8, %v458_v15 }
 0x176   :  { %v652_v16 = vmul.f32 1.442695, %v603_v44  ;;  %v557_v18 = vadd.f32 %v1342_v8, %v467_v14 }
 0x177   :  { %v586_v21 = vsub.f32 0.0, %v554_v19 }
 0x178   :  { %941 = vpow2.f32 %v652_v16  ;;  %v589_v20 = vsub.f32 0.0, %v557_v18  ;;  %v506_v23 = vpop.xlane.xlu0 %505 }
 0x179   :  { %943 = vpow2.f32 %v620_v17  ;;  %v515_v22 = vpop.xlane.xlu1 %514  ;;  %v618_v25 = vmul.f32 1.442695, %v586_v21  ;;  %v570_v27 = vadd.f32 %v1342_v8, %v506_v23 }
 0x17a   :  { %v624_v24 = vmul.f32 1.442695, %v589_v20  ;;  %v573_v26 = vadd.f32 %v1342_v8, %v515_v22 }
 0x17b   :  { %v602_v29 = vsub.f32 0.0, %v570_v27 }
 0x17c   :  { %945 = vpow2.f32 %v624_v24  ;;  %v605_v28 = vsub.f32 0.0, %v573_v26  ;;  %v512_v31 = vpop.xlane.xlu0 %511 }
 0x17d   :  { %947 = vpow2.f32 %v618_v25  ;;  %v464_v30 = vpop.xlane.xlu1 %463  ;;  %v650_v33 = vmul.f32 1.442695, %v602_v29  ;;  %v572_v36 = vadd.f32 %v1342_v8, %v512_v31 }
 0x17e   :  { %v656_v32 = vmul.f32 1.442695, %v605_v28  ;;  %v556_v34 = vadd.f32 %v1342_v8, %v464_v30 }
 0x17f   :  { %v604_v38 = vsub.f32 0.0, %v572_v36 }
 0x180   :  { %949 = vpow2.f32 %v656_v32  ;;  %v588_v37 = vsub.f32 0.0, %v556_v34  ;;  %v470_v40 = vpop.xlane.xlu0 %469 }
 0x181   :  { %951 = vpow2.f32 %v650_v33  ;;  %v473_v39 = vpop.xlane.xlu1 %472  ;;  %v558_v45 = vadd.f32 %v1342_v8, %v470_v40  ;;  %v654_v48 = vmul.f32 1.442695, %v604_v38 }
 0x182   :  { %v942_v41 = vpop.eup %941  ;;  %v622_v42 = vmul.f32 1.442695, %v588_v37  ;;  %v559_v43 = vadd.f32 %v1342_v8, %v473_v39 }
 0x183   :  { %v944_v46 = vpop.eup %943  ;;  %v699_v47 = vadd.f32 1.0, %v942_v41  ;;  %v590_v51 = vsub.f32 0.0, %v558_v45 }
 0x184   :  { %v683_v49 = vadd.f32 1.0, %v944_v46  ;;  %953 = vpow2.f32 %v622_v42  ;;  %v591_v50 = vsub.f32 0.0, %v559_v43  ;;  %v518_v53 = vpop.xlane.xlu0 %517 }
 0x185   :  { %955 = vrcp.f32 %v699_v47  ;;  %v521_v52 = vpop.xlane.xlu1 %520  ;;  %v626_v59 = vmul.f32 1.442695, %v590_v51  ;;  %v574_v60 = vadd.f32 %v1342_v8, %v518_v53 }
 0x186   :  { %v946_v54 = vpop.eup %945  ;;  %957 = vrcp.f32 %v683_v49  ;;  %v628_v55 = vmul.f32 1.442695, %v591_v50  ;;  %v575_v56 = vadd.f32 %v1342_v8, %v521_v52 }
 0x187   :  { %v948_v57 = vpop.eup %947  ;;  %v685_v58 = vadd.f32 1.0, %v946_v54  ;;  %959 = vpow2.f32 %v654_v48  ;;  %v606_v63 = vsub.f32 0.0, %v574_v60 }
 0x188   :  { %v682_v61 = vadd.f32 1.0, %v948_v57  ;;  %961 = vpow2.f32 %v628_v55  ;;  %v607_v62 = vsub.f32 0.0, %v575_v56  ;;  %v476_v35 = vpop.xlane.xlu0 %475 }
 0x189   :  { %963 = vrcp.f32 %v685_v58  ;;  %v479_v0 = vpop.xlane.xlu1 %478  ;;  %v560_v4 = vadd.f32 %v1342_v8, %v476_v35  ;;  %v658_v7 = vmul.f32 1.442695, %v606_v63 }
 0x18a   :  { %v950_v1 = vpop.eup %949  ;;  %965 = vrcp.f32 %v682_v61  ;;  %v660_v2 = vmul.f32 1.442695, %v607_v62  ;;  %v561_v3 = vadd.f32 %v1342_v8, %v479_v0 }
 0x18b   :  { %v952_v5 = vpop.eup %951  ;;  %v701_v6 = vadd.f32 1.0, %v950_v1  ;;  %967 = vpow2.f32 %v626_v59  ;;  %v592_v11 = vsub.f32 0.0, %v560_v4 }
 0x18c   :  { %v698_v9 = vadd.f32 1.0, %v952_v5  ;;  %969 = vpow2.f32 %v660_v2  ;;  %v593_v10 = vsub.f32 0.0, %v561_v3  ;;  %v524_v44 = vpop.xlane.xlu0 %523 }
 0x18d   :  { %971 = vrcp.f32 %v701_v6  ;;  %v527_v12 = vpop.xlane.xlu1 %526  ;;  %v630_v15 = vmul.f32 1.442695, %v592_v11  ;;  %v576_v19 = vadd.f32 %v1342_v8, %v524_v44 }
 0x18e   :  { %v954_v13 = vpop.eup %953  ;;  %973 = vrcp.f32 %v698_v9  ;;  %v632_v14 = vmul.f32 1.442695, %v593_v10  ;;  %v577_v16 = vadd.f32 %v1342_v8, %v527_v12 }
 0x18f   :  { %v956_v17 = vpop.eup %955  ;;  %v684_v18 = vadd.f32 1.0, %v954_v13  ;;  %975 = vpow2.f32 %v658_v7  ;;  %v608_v23 = vsub.f32 0.0, %v576_v19 }
 0x190   :  { %v958_v20 = vpop.eup %957  ;;  %796 = vst.msk [vmem:[%s1509_s5 + $0x88] sm:$0xff] %vm778_vm2, %v956_v17  ;;  %977 = vpow2.f32 %v632_v14  ;;  %v609_v21 = vsub.f32 0.0, %v577_v16  ;;  %v482_v25 = vpop.xlane.xlu0 %481 }
 0x191   :  { %v960_v22 = vpop.eup %959  ;;  %780 = vst.msk [vmem:[%s1509_s5 + $0x8] sm:$0xff] %vm778_vm2, %v958_v20  ;;  %979 = vrcp.f32 %v684_v18  ;;  %v485_v24 = vpop.xlane.xlu1 %484  ;;  %v662_v32 = vmul.f32 1.442695, %v608_v23  ;;  %v562_v33 = vadd.f32 %v1342_v8, %v482_v25 }
 0x192   :  { %v962_v26 = vpop.eup %961  ;;  %v700_v27 = vadd.f32 1.0, %v960_v22  ;;  %981 = vpow2.f32 %v630_v15  ;;  %v664_v28 = vmul.f32 1.442695, %v609_v21  ;;  %v563_v29 = vadd.f32 %v1342_v8, %v485_v24 }
 0x193   :  { %v964_v30 = vpop.eup %963  ;;  %v687_v31 = vadd.f32 1.0, %v962_v26  ;;  %v594_v38 = vsub.f32 0.0, %v562_v33 }
 0x194   :  { %v966_v34 = vpop.eup %965  ;;  %782 = vst.msk [vmem:[%s1509_s5 + $0x18] sm:$0xff] %vm778_vm2, %v964_v30  ;;  %983 = vrcp.f32 %v700_v27  ;;  %v595_v36 = vsub.f32 0.0, %v563_v29  ;;  %v530_v40 = vpop.xlane.xlu0 %529 }
 0x195   :  { %v968_v37 = vpop.eup %967  ;;  %779 = vst.msk [vmem:[%s1509_s5] sm:$0xff] %vm778_vm2, %v966_v34  ;;  %985 = vrcp.f32 %v687_v31  ;;  %v533_v39 = vpop.xlane.xlu1 %532  ;;  %v634_v48 = vmul.f32 1.442695, %v594_v38  ;;  %v578_v49 = vadd.f32 %v1342_v8, %v530_v40 }
 0x196   :  { %v970_v41 = vpop.eup %969  ;;  %v686_v42 = vadd.f32 1.0, %v968_v37  ;;  %987 = vpow2.f32 %v664_v28  ;;  %v636_v43 = vmul.f32 1.442695, %v595_v36  ;;  %v579_v45 = vadd.f32 %v1342_v8, %v533_v39 }
 0x197   :  { %v972_v46 = vpop.eup %971  ;;  %v703_v47 = vadd.f32 1.0, %v970_v41  ;;  %989 = vpow2.f32 %v662_v32  ;;  %v610_v53 = vsub.f32 0.0, %v578_v49 }
 0x198   :  { %v974_v50 = vpop.eup %973  ;;  %798 = vst.msk [vmem:[%s1509_s5 + $0x98] sm:$0xff] %vm778_vm2, %v972_v46  ;;  %991 = vrcp.f32 %v686_v42  ;;  %v611_v51 = vsub.f32 0.0, %v579_v45  ;;  %v488_v55 = vpop.xlane.xlu0 %487 }
 0x199   :  { %v976_v52 = vpop.eup %975  ;;  %795 = vst.msk [vmem:[%s1509_s5 + $0x80] sm:$0xff] %vm778_vm2, %v974_v50  ;;  %993 = vrcp.f32 %v703_v47  ;;  %v491_v54 = vpop.xlane.xlu1 %490  ;;  %v564_v62 = vadd.f32 %v1342_v8, %v488_v55  ;;  %v666_v0 = vmul.f32 1.442695, %v610_v53 }
 0x19a   :  { %v978_v56 = vpop.eup %977  ;;  %v702_v57 = vadd.f32 1.0, %v976_v52  ;;  %995 = vpow2.f32 %v636_v43  ;;  %v668_v58 = vmul.f32 1.442695, %v611_v51  ;;  %v565_v59 = vadd.f32 %v1342_v8, %v491_v54 }
 0x19b   :  { %v980_v60 = vpop.eup %979  ;;  %v689_v61 = vadd.f32 1.0, %v978_v56  ;;  %997 = vpow2.f32 %v634_v48  ;;  %v596_v2 = vsub.f32 0.0, %v564_v62 }
 0x19c   :  { %v982_v63 = vpop.eup %981  ;;  %781 = vst.msk [vmem:[%s1509_s5 + $0x10] sm:$0xff] %vm778_vm2, %v980_v60  ;;  %999 = vrcp.f32 %v702_v57  ;;  %v597_v35 = vsub.f32 0.0, %v565_v59  ;;  %v536_v4 = vpop.xlane.xlu0 %535 }
 0x19d   :  { %1001 = vrcp.f32 %v689_v61  ;;  %v688_v1 = vadd.f32 1.0, %v982_v63  ;;  %v539_v3 = vpop.xlane.xlu1 %538  ;;  %v580_v9 = vadd.f32 %v1342_v8, %v536_v4  ;;  %v638_v11 = vmul.f32 1.442695, %v596_v2 }
 0x19e   :  { %v984_v5 = vpop.eup %983  ;;  %1003 = vpow2.f32 %v668_v58  ;;  %v640_v6 = vmul.f32 1.442695, %v597_v35  ;;  %v581_v7 = vadd.f32 %v1342_v8, %v539_v3 }
 0x19f   :  { %v986_v10 = vpop.eup %985  ;;  %797 = vst.msk [vmem:[%s1509_s5 + $0x90] sm:$0xff] %vm778_vm2, %v984_v5  ;;  %1005 = vrcp.f32 %v688_v1  ;;  %v612_v13 = vsub.f32 0.0, %v580_v9 }
 0x1a0   :  { %v988_v12 = vpop.eup %987  ;;  %784 = vst.msk [vmem:[%s1509_s5 + $0x28] sm:$0xff] %vm778_vm2, %v986_v10  ;;  %1007 = vpow2.f32 %v666_v0  ;;  %v613_v44 = vsub.f32 0.0, %v581_v7  ;;  %v494_v17 = vpop.xlane.xlu0 %493 }
 0x1a1   :  { %v990_v14 = vpop.eup %989  ;;  %v705_v15 = vadd.f32 1.0, %v988_v12  ;;  %1009 = vpow2.f32 %v640_v6  ;;  %v497_v16 = vpop.xlane.xlu1 %496  ;;  %v670_v21 = vmul.f32 1.442695, %v612_v13  ;;  %v566_v24 = vadd.f32 %v1342_v8, %v494_v17 }
 0x1a2   :  { %v992_v18 = vpop.eup %991  ;;  %v704_v19 = vadd.f32 1.0, %v990_v14  ;;  %1011 = vpow2.f32 %v638_v11  ;;  %v672_v20 = vmul.f32 1.442695, %v613_v44  ;;  %v567_v23 = vadd.f32 %v1342_v8, %v497_v16 }
 0x1a3   :  { %v994_v22 = vpop.eup %993  ;;  %783 = vst.msk [vmem:[%s1509_s5 + $0x20] sm:$0xff] %vm778_vm2, %v992_v18  ;;  %1013 = vrcp.f32 %v705_v15  ;;  %v598_v29 = vsub.f32 0.0, %v566_v24 }
 0x1a4   :  { %v996_v25 = vpop.eup %995  ;;  %800 = vst.msk [vmem:[%s1509_s5 + $0xa8] sm:$0xff] %vm778_vm2, %v994_v22  ;;  %1015 = vrcp.f32 %v704_v19  ;;  %v599_v28 = vsub.f32 0.0, %v567_v23  ;;  %v542_v31 = vpop.xlane.xlu0 %541 }
 0x1a5   :  { %v998_v26 = vpop.eup %997  ;;  %v691_v27 = vadd.f32 1.0, %v996_v25  ;;  %1017 = vpow2.f32 %v672_v20  ;;  %v545_v30 = vpop.xlane.xlu1 %544  ;;  %v582_v36 = vadd.f32 %v1342_v8, %v542_v31  ;;  %v642_v39 = vmul.f32 1.442695, %v598_v29 }
 0x1a6   :  { %v1000_v32 = vpop.eup %999  ;;  %v690_v33 = vadd.f32 1.0, %v998_v26  ;;  %1019 = vpow2.f32 %v670_v21  ;;  %v583_v34 = vadd.f32 %v1342_v8, %v545_v30  ;;  %v644_v38 = vmul.f32 1.442695, %v599_v28 }
 0x1a7   :  { %v1002_v37 = vpop.eup %1001  ;;  %799 = vst.msk [vmem:[%s1509_s5 + $0xa0] sm:$0xff] %vm778_vm2, %v1000_v32  ;;  %1021 = vrcp.f32 %v691_v27  ;;  %v614_v42 = vsub.f32 0.0, %v582_v36 }
 0x1a8   :  { %v1004_v40 = vpop.eup %1003  ;;  %786 = vst.msk [vmem:[%s1509_s5 + $0x38] sm:$0xff] %vm778_vm2, %v1002_v37  ;;  %1023 = vrcp.f32 %v690_v33  ;;  %v615_v41 = vsub.f32 0.0, %v583_v34  ;;  %v500_v47 = vpop.xlane.xlu0 %499 }
 0x1a9   :  { %v1006_v43 = vpop.eup %1005  ;;  %v707_v45 = vadd.f32 1.0, %v1004_v40  ;;  %1025 = vpow2.f32 %v644_v38  ;;  %v503_v46 = vpop.xlane.xlu1 %502  ;;  %v568_v53 = vadd.f32 %v1342_v8, %v500_v47  ;;  %v674_v56 = vmul.f32 1.442695, %v614_v42 }
 0x1aa   :  { %v1008_v48 = vpop.eup %1007  ;;  %785 = vst.msk [vmem:[%s1509_s5 + $0x30] sm:$0xff] %vm778_vm2, %v1006_v43  ;;  %1027 = vpow2.f32 %v642_v39  ;;  %v676_v49 = vmul.f32 1.442695, %v615_v41  ;;  %v569_v50 = vadd.f32 %v1342_v8, %v503_v46 }
 0x1ab   :  { %v1010_v51 = vpop.eup %1009  ;;  %1029 = vrcp.f32 %v707_v45  ;;  %v706_v52 = vadd.f32 1.0, %v1008_v48  ;;  %v600_v60 = vsub.f32 0.0, %v568_v53 }
 0x1ac   :  { %v1012_v54 = vpop.eup %1011  ;;  %v693_v55 = vadd.f32 1.0, %v1010_v51  ;;  %1031 = vpow2.f32 %v676_v49  ;;  %v601_v57 = vsub.f32 0.0, %v569_v50  ;;  %v548_v62 = vpop.xlane.xlu0 %547 }
 0x1ad   :  { %v1014_v58 = vpop.eup %1013  ;;  %1033 = vrcp.f32 %v706_v52  ;;  %v692_v59 = vadd.f32 1.0, %v1012_v54  ;;  %v551_v61 = vpop.xlane.xlu1 %550  ;;  %v584_v1 = vadd.f32 %v1342_v8, %v548_v62  ;;  %v646_v3 = vmul.f32 1.442695, %v600_v60 }
 0x1ae   :  { %v1016_v63 = vpop.eup %1015  ;;  %802 = vst.msk [vmem:[%s1509_s5 + $0xb8] sm:$0xff] %vm778_vm2, %v1014_v58  ;;  %1035 = vrcp.f32 %v693_v55  ;;  %v648_v0 = vmul.f32 1.442695, %v601_v57  ;;  %v585_v35 = vadd.f32 %v1342_v8, %v551_v61 }
 0x1af   :  { %v1018_v2 = vpop.eup %1017  ;;  %801 = vst.msk [vmem:[%s1509_s5 + $0xb0] sm:$0xff] %vm778_vm2, %v1016_v63  ;;  %1037 = vrcp.f32 %v692_v59  ;;  %v616_v7 = vsub.f32 0.0, %v584_v1 }
 0x1b0   :  { %v1020_v4 = vpop.eup %1019  ;;  %v709_v5 = vadd.f32 1.0, %v1018_v2  ;;  %1039 = vpow2.f32 %v674_v56  ;;  %v617_v6 = vsub.f32 0.0, %v585_v35 }
 0x1b1   :  { %v1022_v9 = vpop.eup %1021  ;;  %v708_v10 = vadd.f32 1.0, %v1020_v4  ;;  %1041 = vpow2.f32 %v648_v0  ;;  %v678_v14 = vmul.f32 1.442695, %v616_v7 }
 0x1b2   :  { %v1024_v11 = vpop.eup %1023  ;;  %788 = vst.msk [vmem:[%s1509_s5 + $0x48] sm:$0xff] %vm778_vm2, %v1022_v9  ;;  %1043 = vrcp.f32 %v709_v5  ;;  %v680_v8 = vmul.f32 1.442695, %v617_v6 }
 0x1b3   :  { %v1026_v12 = vpop.eup %1025  ;;  %787 = vst.msk [vmem:[%s1509_s5 + $0x40] sm:$0xff] %vm778_vm2, %v1024_v11  ;;  %1045 = vrcp.f32 %v708_v10 }
 0x1b4   :  { %v1028_v44 = vpop.eup %1027  ;;  %v695_v13 = vadd.f32 1.0, %v1026_v12  ;;  %1047 = vpow2.f32 %v646_v3 }
 0x1b5   :  { %v1030_v15 = vpop.eup %1029  ;;  %v694_v16 = vadd.f32 1.0, %v1028_v44  ;;  %1049 = vpow2.f32 %v680_v8 }
 0x1b6   :  { %v1032_v17 = vpop.eup %1031  ;;  %804 = vst.msk [vmem:[%s1509_s5 + $0xc8] sm:$0xff] %vm778_vm2, %v1030_v15  ;;  %1051 = vrcp.f32 %v695_v13 }
 0x1b7   :  { %v1034_v18 = vpop.eup %1033  ;;  %1053 = vrcp.f32 %v694_v16  ;;  %v711_v19 = vadd.f32 1.0, %v1032_v17 }
 0x1b8   :  { %v1036_v20 = vpop.eup %1035  ;;  %803 = vst.msk [vmem:[%s1509_s5 + $0xc0] sm:$0xff] %vm778_vm2, %v1034_v18  ;;  %1055 = vpow2.f32 %v678_v14 }
 0x1b9   :  { %v1038_v21 = vpop.eup %1037  ;;  %790 = vst.msk [vmem:[%s1509_s5 + $0x58] sm:$0xff] %vm778_vm2, %v1036_v20  ;;  %1057 = vrcp.f32 %v711_v19 }
 0x1ba   :  { %v1040_v22 = vpop.eup %1039  ;;  %789 = vst.msk [vmem:[%s1509_s5 + $0x50] sm:$0xff] %vm778_vm2, %v1038_v21 }
 0x1bb   :  { %v1042_v23 = vpop.eup %1041  ;;  %v710_v24 = vadd.f32 1.0, %v1040_v22 }
 0x1bc   :  { %v1044_v25 = vpop.eup %1043  ;;  %v697_v26 = vadd.f32 1.0, %v1042_v23 }
 0x1bd   :  { %v1046_v27 = vpop.eup %1045  ;;  %806 = vst.msk [vmem:[%s1509_s5 + $0xd8] sm:$0xff] %vm778_vm2, %v1044_v25  ;;  %1059 = vrcp.f32 %v710_v24 }
 0x1be   :  { %v1048_v28 = vpop.eup %1047  ;;  %805 = vst.msk [vmem:[%s1509_s5 + $0xd0] sm:$0xff] %vm778_vm2, %v1046_v27  ;;  %1061 = vrcp.f32 %v697_v26 }
 0x1bf   :  { %v1050_v29 = vpop.eup %1049  ;;  %v696_v30 = vadd.f32 1.0, %v1048_v28 }
 0x1c0   :  { %v1052_v31 = vpop.eup %1051  ;;  %v713_v32 = vadd.f32 1.0, %v1050_v29 }
 0x1c1   :  { %v1054_v33 = vpop.eup %1053  ;;  %792 = vst.msk [vmem:[%s1509_s5 + $0x68] sm:$0xff] %vm778_vm2, %v1052_v31  ;;  %1063 = vrcp.f32 %v696_v30 }
 0x1c2   :  { %v1056_v34 = vpop.eup %1055  ;;  %791 = vst.msk [vmem:[%s1509_s5 + $0x60] sm:$0xff] %vm778_vm2, %v1054_v33  ;;  %1065 = vrcp.f32 %v713_v32 }
 0x1c3   :  { %v1058_v36 = vpop.eup %1057  ;;  %v712_v37 = vadd.f32 1.0, %v1056_v34 }
 0x1c4   :  { %808 = vst.msk [vmem:[%s1509_s5 + $0xe8] sm:$0xff] %vm778_vm2, %v1058_v36 }
 0x1c5   :  { %1067 = vrcp.f32 %v712_v37 }
 0x1c7   :  { %v1060_v38 = vpop.eup %1059 }
 0x1c8   :  { %v1062_v39 = vpop.eup %1061  ;;  %807 = vst.msk [vmem:[%s1509_s5 + $0xe0] sm:$0xff] %vm778_vm2, %v1060_v38 }
 0x1c9   :  { %794 = vst.msk [vmem:[%s1509_s5 + $0x78] sm:$0xff] %vm778_vm2, %v1062_v39 }
 0x1cb   :  { %v1064_v40 = vpop.eup %1063 }
 0x1cc   :  { %v1066_v41 = vpop.eup %1065  ;;  %793 = vst.msk [vmem:[%s1509_s5 + $0x70] sm:$0xff] %vm778_vm2, %v1064_v40 }
 0x1cd   :  { %810 = vst.msk [vmem:[%s1509_s5 + $0xf8] sm:$0xff] %vm778_vm2, %v1066_v41 }
 0x1cf   :  { %v1068_v42 = vpop.eup %1067 }
 0x1d0   :  { %809 = vst.msk [vmem:[%s1509_s5 + $0xf0] sm:$0xff] %vm778_vm2, %v1068_v42 }

</bundles_post_ra>
